<compile_context>
chip_gen: v6e
topology: v6e:2x2x1
jax: 0.10.0
libtpu: 0.0.40
codegen_flags: <defaults>
</compile_context>

<pallas_src>
import functools

import jax
import jax.numpy as jnp
from jax.experimental import pallas as pl
from jax.experimental.pallas import tpu as pltpu


def _energy_kernel(x_ref, mu_t_ref, kb_ref, out_ref, *, approx_recip):
    # Hoist SMEM scalar reads once.
    k_scale = kb_ref[0]
    b_shift = kb_ref[1]

    xb = x_ref[...]                                   # (BB, T, E) in x dtype
    BB, T, E = xb.shape
    K = mu_t_ref.shape[1]

    # (1) scores: one lane-dense 2-D MXU matmul, f32 accumulation.
    #     mu_t is (E, K), already scaled by 1/sqrt(E) and in x's dtype.
    x2 = xb.reshape(BB * T, E)
    scores_tk = jnp.dot(x2, mu_t_ref[...],
                        preferred_element_type=jnp.float32).reshape(BB, T, K)

    # (2) softmax over T with T on the lane axis (only a small (T,K) transpose).
    scores_kt = jnp.swapaxes(scores_tk, 1, 2)          # (BB, K, T) f32
    m = jnp.max(scores_kt, axis=-1, keepdims=True)
    p = jnp.exp(scores_kt - m)
    inv = pl.reciprocal(jnp.sum(p, axis=-1, keepdims=True), approx=approx_recip)
    att_kt = p * inv                                    # (BB, K, T) f32
    att_tk = jnp.swapaxes(att_kt, 1, 2)                 # (BB, T, K) f32 (for dx)

    # (3) sel / dx: batched MXU contractions, operands in x dtype, f32 accum.
    cdt = xb.dtype
    sel = jax.lax.dot_general(                          # (BB, K, E)
        att_kt.astype(cdt), xb,
        (((2,), (1,)), ((0,), (0,))),
        preferred_element_type=jnp.float32)
    dx = jax.lax.dot_general(                           # (BB, T, E)
        att_tk.astype(cdt), sel.astype(cdt),
        (((2,), (1,)), ((0,), (0,))),
        preferred_element_type=jnp.float32)

    out = k_scale * (xb.astype(jnp.float32) + dx) + b_shift
    out_ref[...] = out.astype(out_ref.dtype)


def _vmem_capacity_bytes():
    try:
        info = pltpu.get_tpu_info()
        for name in ("vmem_capacity_bytes", "vmem_size_bytes", "vmem_bytes"):
            v = getattr(info, name, None)
            if v:
                return int(v)
    except Exception:
        pass
    return 64 << 20  # conservative: smallest per-TC VMEM of v5e/v6e/v7x


def _live_vmem_bytes(bb, T, E, K, itemsize):
    f32 = 4
    blk = bb * T * E
    live = 2 * 2 * blk * itemsize          # double-buffered input + output blocks
    live += 2 * blk * f32                  # f32 upcast of x tile + dx intermediate
    live += 4 * bb * K * T * f32           # scores (both orientations), exp, att
    live += 2 * bb * K * E * f32           # sel (+ low-precision copy)
    live += 2 * E * K * itemsize           # mu (double-buffered by the pipeline)
    return live


def _pick_batch_block(B, T, E, K, itemsize):
    """Largest divisor BB of B whose live VMEM fits, keeping grid >= min(4, B)."""
    cap = _vmem_capacity_bytes()
    target = min(cap // 3, 24 << 20)       # headroom for pipeline + compiler scratch
    min_grid = min(4, B)                   # keep HBM pipeline / v7x megacore fed
    bb = 1
    for cand in range(1, B + 1):
        if B % cand:
            continue
        if B // cand < min_grid:
            continue
        if _live_vmem_bytes(cand, T, E, K, itemsize) <= target:
            bb = cand
    live = _live_vmem_bytes(bb, T, E, K, itemsize)
    # TODO(synk): if live > target even at bb == 1 (very long T), add a second
    # "arbitrary" grid axis over T with online-softmax accumulation of sel and a
    # second T pass for dx instead of relying on BB shrinking.
    vmem_limit = int(min(max(32 << 20, 2 * live + (4 << 20)), cap * 7 // 8))
    return bb, vmem_limit


def first_order_low_rank_energy(x, mu, wr, wl, k_scalar, b_scalar):
    """x: (B, T, E); mu: (K, E); wr: (D, K*E); wl: (K*E, D); k, b scalars.

    wr/wl parameterize the kedr/kedl branch, which does not contribute to the
    returned tensor; they are accepted only for API parity with the module.
    """
    del wr, wl
    B, T, E = x.shape
    K = mu.shape[0]
    x_dt = x.dtype
    itemsize = jnp.dtype(x_dt).itemsize

    BB, vmem_limit = _pick_batch_block(B, T, E, K, itemsize)
    # TODO(synk): when E % 128 != 0, repack in/out blocks to a lane-dense
    # (BB, T*E) slab (avoids masked vst.msk stores) once the in-kernel minor-dim
    # reshape is available for this layout.

    # Fold 1/sqrt(E) into mu, carry it in x's dtype, pre-transpose to (E, K).
    mu_t = (mu.astype(jnp.float32) * (E ** -0.5)).astype(x_dt).T
    kb = jnp.stack([jnp.asarray(k_scalar, jnp.float32),
                    jnp.asarray(b_scalar, jnp.float32)])

    approx_recip = jnp.dtype(x_dt) != jnp.dtype(jnp.float32)

    flops = 3 * 2 * B * K * T * E                 # scores + sel + dx matmuls
    transcendentals = B * K * T                   # exp in softmax
    bytes_accessed = 2 * B * T * E * itemsize + E * K * itemsize + 8

    kernel = functools.partial(_energy_kernel, approx_recip=approx_recip)

    return pl.pallas_call(
        kernel,
        grid=(B // BB,),
        in_specs=[
            pl.BlockSpec((BB, T, E), lambda i: (i, 0, 0)),
            pl.BlockSpec((E, K), lambda i: (0, 0)),
            pl.BlockSpec(memory_space=pltpu.MemorySpace.SMEM),
        ],
        out_specs=pl.BlockSpec((BB, T, E), lambda i: (i, 0, 0)),
        out_shape=jax.ShapeDtypeStruct((B, T, E), x_dt),
        compiler_params=pltpu.CompilerParams(
            dimension_semantics=("parallel",),
            vmem_limit_bytes=vmem_limit),
        cost_estimate=pl.CostEstimate(flops=flops,
                                      transcendentals=transcendentals,
                                      bytes_accessed=bytes_accessed),
    )(x, mu_t, kb)


if __name__ == "__main__":
    B, T, E, K, D = 2, 8, 32, 4, 16

    key = jax.random.PRNGKey(0)
    k_x, k_mu, k_r, k_l = jax.random.split(key, 4)

    x = jax.random.normal(k_x, (B, T, E), dtype=jnp.float32)
    mu = jax.random.uniform(k_mu, (K, E), dtype=jnp.float32,
                            minval=-1.0 / K ** 0.5, maxval=1.0 / K ** 0.5)
    wr = jax.random.uniform(k_r, (D, K * E), dtype=jnp.float32,
                            minval=-1.0 / (K * E) ** 0.5,
                            maxval=1.0 / (K * E) ** 0.5)
    wl = jax.random.uniform(k_l, (K * E, D), dtype=jnp.float32,
                            minval=-1.0 / D ** 0.5, maxval=1.0 / D ** 0.5)
    k_param = jnp.float32(1.0)
    b_param = jnp.float32(0.0)

    # Pure-JAX reference of the returned value (the xr/dsel branch is dead).
    att = jax.nn.softmax(jnp.einsum('ke,bte->bkt', mu, x) / (E ** 0.5), axis=-1)
    sel = jnp.einsum('bkt,bte->bke', att, x)
    dx = jnp.einsum('bkt,bke->bte', att, sel)
    ref = k_param * (x + dx) + b_param

    # f32 path (exact reciprocal, f32 MXU operands).
    out = jax.block_until_ready(
        first_order_low_rank_energy(x, mu, wr, wl, k_param, b_param))
    assert out.shape == (B, T, E) and out.dtype == x.dtype
    assert jnp.allclose(out, ref, atol=1e-5, rtol=1e-5), \
        float(jnp.max(jnp.abs(out - ref)))

    # bf16 fast path: x stays bf16 end-to-end (no wrapper upcast, bf16 output),
    # softmax still f32 in-kernel.
    x_bf = x.astype(jnp.bfloat16)
    out_bf = jax.block_until_ready(
        first_order_low_rank_energy(x_bf, mu, wr, wl, k_param, b_param))
    assert out_bf.shape == (B, T, E) and out_bf.dtype == jnp.bfloat16
    assert jnp.allclose(out_bf.astype(jnp.float32), ref, atol=5e-2, rtol=5e-2), \
        float(jnp.max(jnp.abs(out_bf.astype(jnp.float32) - ref)))

    print("KERNEL_OK")
</pallas_src>

<mosaic_0001>
module attributes {stable_mosaic.version = 11 : i64} {
  func.func @_energy_kernel(%arg0: i32, %arg1: memref<1x8x32xf32, #tpu.memory_space<vmem>>, %arg2: memref<32x4xf32, #tpu.memory_space<vmem>>, %arg3: memref<2xf32, #tpu.memory_space<smem>>, %arg4: memref<1x8x32xf32, #tpu.memory_space<vmem>>) attributes {dimension_semantics = [#tpu.dimension_semantics<parallel>], iteration_bounds = array<i64: 2>, scalar_prefetch = 0 : i64, scratch_operands = 0 : i64, tpu.core_type = #tpu.core_type<tc>, window_params = [{transform_indices = @transform_0, window_bounds = array<i64: 1, 8, 32>}, {pipeline_mode = #tpu.pipeline_mode<synchronous>, transform_indices = @transform_1, window_bounds = array<i64: 32, 4>}, {transform_indices = @transform_2, window_bounds = array<i64: 2>}, {transform_indices = @transform_3, window_bounds = array<i64: 1, 8, 32>}]} {
    %c0 = arith.constant 0 : index
    %0 = memref.load %arg3[%c0] : memref<2xf32, #tpu.memory_space<smem>>
    %c1 = arith.constant 1 : index
    %1 = memref.load %arg3[%c1] : memref<2xf32, #tpu.memory_space<smem>>
    %c0_0 = arith.constant 0 : index
    %c0_1 = arith.constant 0 : index
    %c0_2 = arith.constant 0 : index
    %2 = vector.load %arg1[%c0_0, %c0_1, %c0_2] : memref<1x8x32xf32, #tpu.memory_space<vmem>>, vector<1x8x32xf32>
    %3 = vector.shape_cast %2 : vector<1x8x32xf32> to vector<8x32xf32>
    %c0_3 = arith.constant 0 : index
    %c0_4 = arith.constant 0 : index
    %4 = vector.load %arg2[%c0_3, %c0_4] : memref<32x4xf32, #tpu.memory_space<vmem>>, vector<32x4xf32>
    %cst = arith.constant dense<0.000000e+00> : vector<8x4xf32>
    %5 = tpu.matmul %3, %4, %cst {dimension_numbers = #tpu.dot_dimension_numbers<[1], [0], [0], [1], [0, 0, 1, 1], [], []>} : vector<8x32xf32>, vector<32x4xf32>, vector<8x4xf32> -> vector<8x4xf32>
    %6 = vector.shape_cast %5 : vector<8x4xf32> to vector<1x8x4xf32>
    %7 = tpu.transpose %6, [0, 2, 1] : vector<1x8x4xf32> -> vector<1x4x8xf32>
    %cst_5 = arith.constant dense<0xFF800000> : vector<1x4xf32>
    %8 = vector.multi_reduction <maximumf>, %7, %cst_5 [2] : vector<1x4x8xf32> to vector<1x4xf32>
    %9 = vector.shape_cast %8 : vector<1x4xf32> to vector<1x4x1xf32>
    %10 = vector.broadcast %9 : vector<1x4x1xf32> to vector<1x4x8xf32>
    %11 = arith.subf %7, %10 : vector<1x4x8xf32>
    %12 = math.exp %11 : vector<1x4x8xf32>
    %cst_6 = arith.constant dense<0.000000e+00> : vector<1x4xf32>
    %13 = vector.multi_reduction <add>, %12, %cst_6 [2] : vector<1x4x8xf32> to vector<1x4xf32>
    %14 = vector.shape_cast %13 : vector<1x4xf32> to vector<1x4x1xf32>
    %15 = tpu.reciprocal %14 : vector<1x4x1xf32> -> vector<1x4x1xf32>
    %16 = vector.broadcast %15 : vector<1x4x1xf32> to vector<1x4x8xf32>
    %17 = arith.mulf %12, %16 : vector<1x4x8xf32>
    %18 = tpu.transpose %17, [0, 2, 1] : vector<1x4x8xf32> -> vector<1x8x4xf32>
    %cst_7 = arith.constant dense<0.000000e+00> : vector<1x4x32xf32>
    %19 = tpu.matmul %17, %2, %cst_7 {dimension_numbers = #tpu.dot_dimension_numbers<[2], [1], [1], [2], [0, 0, 0, 1, 1, 2], [0], [0]>} : vector<1x4x8xf32>, vector<1x8x32xf32>, vector<1x4x32xf32> -> vector<1x4x32xf32>
    %cst_8 = arith.constant dense<0.000000e+00> : vector<1x8x32xf32>
    %20 = tpu.matmul %18, %19, %cst_8 {dimension_numbers = #tpu.dot_dimension_numbers<[2], [1], [1], [2], [0, 0, 0, 1, 1, 2], [0], [0]>} : vector<1x8x4xf32>, vector<1x4x32xf32>, vector<1x8x32xf32> -> vector<1x8x32xf32>
    %21 = arith.addf %2, %20 : vector<1x8x32xf32>
    %22 = vector.broadcast %0 : f32 to vector<1x8x32xf32>
    %23 = arith.mulf %22, %21 : vector<1x8x32xf32>
    %24 = vector.broadcast %1 : f32 to vector<1x8x32xf32>
    %25 = arith.addf %23, %24 : vector<1x8x32xf32>
    %c0_9 = arith.constant 0 : index
    %c0_10 = arith.constant 0 : index
    %c0_11 = arith.constant 0 : index
    %26 = vector.load %arg4[%c0_9, %c0_10, %c0_11] : memref<1x8x32xf32, #tpu.memory_space<vmem>>, vector<1x8x32xf32>
    tpu.vector_store %arg4[%c0_9, %c0_10, %c0_11], %25 {strides = array<i32>} : memref<1x8x32xf32, #tpu.memory_space<vmem>>, vector<1x8x32xf32>,
    return
  }
  func.func @transform_0(%arg0: i32) -> (i32, i32, i32) {
    %c0_i32 = arith.constant 0 : i32
    %c0_i32_0 = arith.constant 0 : i32
    %c0_i32_1 = arith.constant 0 : i32
    return %arg0, %c0_i32, %c0_i32_0 : i32, i32, i32
  }
  func.func @transform_1(%arg0: i32) -> (i32, i32) {
    %c0_i32 = arith.constant 0 : i32
    %c0_i32_0 = arith.constant 0 : i32
    %c0_i32_1 = arith.constant 0 : i32
    return %c0_i32, %c0_i32_0 : i32, i32
  }
  func.func @transform_2(%arg0: i32) -> i32 {
    %c0_i32 = arith.constant 0 : i32
    %c0_i32_0 = arith.constant 0 : i32
    return %c0_i32 : i32
  }
  func.func @transform_3(%arg0: i32) -> (i32, i32, i32) {
    %c0_i32 = arith.constant 0 : i32
    %c0_i32_0 = arith.constant 0 : i32
    %c0_i32_1 = arith.constant 0 : i32
    return %arg0, %c0_i32, %c0_i32_0 : i32, i32, i32
  }
}

</mosaic_0001>

<bundles_post_ra>
// kernel: tpu_custom_call.1
= control target key start
LH: loop header
LB: loop body
LE: loop exit
PB: predicated region body
PF: predicated region fallthrough
CT: control target
= control target key end

     0   :  { %8 = vsyncpa [#allocation4], 0  ;;  %s910_s0 = inlined_call_operand.vmem [shape: f32[2,8,32], index: 0, kind: input, shape index: {}]   ;;  %s911_s1 = inlined_call_operand.vmem [shape: f32[32,4], index: 1, kind: input, shape index: {}]   ;;  %s912_s2 = inlined_call_operand.vmem [shape: f32[2], index: 2, kind: input, shape index: {}]   ;;  %s913_s3 = inlined_call_operand.hbm [shape: f32[2,8,32], index: 3, kind: output, shape index: {}]  }
   0x1   :  { %9 = vsyncpa [#allocation3], 0 }
   0x2   :  { %11 = vsyncpa [#allocation3 + $0x1], 0  ;;  %s788_s12 = smov 0   ;;  %s790_s13 = smov 0  }
   0x3   :  { %s792_s14 = smov 0   ;;  %s794_s15 = smov 0  }
   0x4 LB: > { %s809_s16 = sadd.s32 4294967295, %s762_s15   ;;  %s580_s17 = sadd.s32 4294967294, %s762_s15   ;;  %s762_s15 = sphi %s794_s15, %s920_s15   ;;  %s758_s14 = sphi %s792_s14, %s919_s14   ;;  %s754_s13 = sphi %s790_s13, %s918_s13   ;;  %s750_s12 = sphi %s788_s12, %s917_s12  }
   0x5   : > { %s813_s18 = sadd.s32 1, %s762_s15   ;;  %s92_s19 = sadd.s32 1, %s758_s14 }
   0x6   : > { %s89_s20 = ssub.s32 %s762_s15, %s813_s18  ;;  %p102_p0 = scmp.ne.s32.totalorder %s758_s14, %s754_s13 }
   0x7   : > { %p90_p1 = scmp.eq.s32.totalorder %s89_s20, 0  ;;  %p103_p2 = scmp.eq.s32.totalorder %s809_s16, 1 }
   0x8   : > { %p108_p3 = scmp.ne.s32.totalorder %s754_s13, %s750_s12  ;;  %p109_p4 = scmp.eq.s32.totalorder %s580_s17, 1 }
   0x9   : > { %s824_s21 = scalar_select %p90_p1, %s758_s14, %s92_s19  }
   0xa   : > { %p826_p5 = por %p103_p2, %p102_p0  ;;  %p830_p6 = por %p109_p4, %p108_p3 }
   0xb   : > { %p581_p7 = scmp.ge.s32.totalorder %s762_s15, 1  ;;  %p116_p8 = scmp.lt.s32.totalorder %s762_s15, 3 }
   0xc   : > { %p641_p9 = scmp.eq.s32.totalorder %s809_s16, 0  ;;  %s132_s27 = sshll.u32 %s912_s2, 4  ;;  %s133_s27 = int_to_ptr.vmem [resolvable:$true] %s132_s27 }
   0xd   : > { %p837_p10 = pnand %p581_p7, %p116_p8  ;;  %s683_s28 = scalar_lea.vmem %s133_s27, 16 }
   0xe   : > { %p684_p13 = scmp.ne.s32.totalorder %s133_s27, %s683_s28  ;;  %p691_p3 = scmp.lt.s32.totalorder %s133_s27, %s133_s27 }
   0xf   : > { %p633_p11 = pneg %p837_p10  ;;  %p692_p4 = scmp.lt.s32.totalorder %s683_s28, %s683_s28 }
  0x11   : > { %p634_p12 = pnand %p641_p9, %p633_p11  ;;  %p693_p7 = por %p692_p4, %p691_p3 }
  0x13   : > { %p685_p0 = pneg %p634_p12 }
  0x15   : > { %p686_p1 = pnand %p685_p0, %p684_p13 }
  0x17   : > { %p687_p2 = pneg %p686_p1 }
  0x19   : > { %p694_p8 = pnand %p693_p7, %p687_p2 }
  0x1b   : > { %697 = shalt.err (!%p694_p8)
}
  0x1c   : > { %s764_s29 = smov [#allocation2]   ;;  %152 = sbr.rel (%p837_p10) target bundleno = 1081 (0x439), region = 32 }
  0x1d   : > { %636 = dma.vmem_to_smem (!%p634_p12), %s133_s27, 16, %s764_s29, [#allocation4]  }
  0x21   : > { %741 = dma.done.wait (%p641_p9), [#allocation4], 16  }
  0x22   : > { %743 = vsyncadd (%p641_p9), [#allocation4], 4294967280 }
  0x23   : > { %158 = sfence }
  0x24   : > { %v186_v0 = vld [vmem:[%s911_s1 + $0x18] sm:$0xff]  ;;  %p176_p11 = scmp.lt.s32.totalorder %s809_s16, 1  ;;  %v765_v1 = vmov 0.0   ;;  %v185_v2 = vld [vmem:[%s911_s1 + $0x10] sm:$0xff]  ;;  %vm766_vm0 = vmmov 0   ;;  %v184_v3 = vld [vmem:[%s911_s1 + $0x8] sm:$0xff] }
  0x25   : > { %606 = vmatprep.subr.mxu0 %v765_v1  ;;  %614 = vmatprep.mubr.msk.f32.mxu0 %vm766_vm0, %v765_v1  ;;  %v183_v4 = vld [vmem:[%s911_s1] sm:$0xff]  ;;  %vm187_vm1 = vcmask 261120   ;;  %vm293_vm2 = vcmask 60416   ;;  %vm337_vm3 = vcmask 64512   ;;  %vm415_vm4 = vcmask 1043456   ;;  %s180_s25 = sld [smem:[#allocation2]] }
  0x26   : > { %607 = vmatpush3.msra.mxu0 %v186_v0  ;;  %s177_s7 = scalar_select %p176_p11, %s809_s16, 1  ;;  %617 = vmatprep.subr.mxu1 %v765_v1  ;;  %vm411_vm5 = vcmask 31744  }
  0x27   : > { %608 = vmatprep.subr.mxu0 %v765_v1  ;;  %619 = vmatprep.mubr.msk.f32.mxu1 %vm766_vm0, %v765_v1  ;;  %s173_s26 = sand.u32 1, %s754_s13   ;;  %s588_s27 = sld [smem:[#allocation2 + $0x1]] }
  0x28   : > { %609 = vmatpush3.msra.mxu0 %v185_v2  ;;  %s587_s10 = sshll.u32 %s177_s7, 3  ;;  %s586_s28 = sshll.u32 %s173_s26, 3 }
  0x29   : > { %610 = vmatprep.subr.mxu0 %v765_v1  ;;  %s179_s24 = scalar_lea.vmem %s910_s0, %s587_s10  ;;  %s594_s29 = sshll.u32 %s809_s16, 7 }
  0x2a   : > { %611 = vmatpush3.msra.mxu0 %v184_v3  ;;  %v182_v5 = vld [vmem:[%s179_s24] sm:$0xff]  ;;  %s175_s30 = scalar_lea.vmem [#allocation5], %s586_s28  ;;  %s507_s7 = scalar_lea.hbm %s913_s3, %s594_s29 }
  0x2b   : > { %612 = vmatprep.subr.mxu0 %v765_v1  ;;  %618 = vmatpush3.msra.mxu1 %v182_v5  ;;  %v490_v22 = vstv %s180_s25  ;;  %s509_s4 = sshll.u32 %s175_s30, 4  ;;  %s496_s8 = scalar_lea.sflag [#allocation3], %s173_s26  ;;  %s510_s4 = int_to_ptr.vmem [resolvable:$true] %s509_s4 }
  0x2c   : > { %613 = vmatpush3.msra.mxu0 %v183_v4  ;;  %622 = vmatprep.subr.mxu1 %v765_v1  ;;  %s698_s9 = scalar_lea.vmem %s510_s4, 128  ;;  %s767_s10 = smov [#allocation5]  }
  0x2d   : > { %615 = vmatmul.mubr.msk.f32.vlgmr.msra.gmra.mxu0 %vm187_vm1, %v182_v5  ;;  %v492_v24 = vstv %s588_s27  ;;  %p699_p9 = scmp.ne.s32.totalorder %s510_s4, %s698_s9  ;;  %s702_s11 = sshll.u32 %s767_s10, 4  ;;  %s703_s11 = int_to_ptr.vmem [resolvable:$false] %s702_s11 }
  0x2e   : > { %s704_s16 = scalar_lea.vmem %s703_s11, 256  ;;  %p705_p13 = scmp.lt.s32.totalorder %s510_s4, %s703_s11 }
  0x2f   : > { %p700_p10 = pnand %p699_p9, %p826_p5  ;;  %p706_p0 = scmp.lt.s32.totalorder %s704_s16, %s698_s9 }
  0x31   : > { %p701_p12 = pneg %p700_p10  ;;  %p707_p1 = por %p706_p0, %p705_p13 }
  0x33   : > { %p708_p2 = pnand %p707_p1, %p701_p12 }
  0xed   : > { %v257_v6 = vpop.f32.mrf.mxu0 }
  0xee   : > { %261 = vxpose.xlu0.b32.start.end [1/1] (short) (narrow) %v257_v6, 8 }
  0xef   : > { %v616_v7 = vpop.f32.mrf.mxu0 }
 0x16a   : > { %v277_v8 = vpop.trf.xlu0 }
 0x16b   : > { %v294_v9 = vsel %vm293_vm2, %v277_v8, -inf }
 0x16c   : > { %295 = vmax.xlane.f32.xlu0 %v294_v9 }
 0x1f5   : > { %v296_v10 = vpop.xlane.xlu0 %295 }
 0x1f6   : > { %v297_v11 = vsub.f32 %v277_v8, %v296_v10 }
 0x1f8   : > { %v298_v12 = vmul.f32 1.442695, %v297_v11 }
 0x1fa   : > { %679 = vpow2.f32 %v298_v12 }
 0x207   : > { %v680_v13 = vpop.eup %679 }
 0x208   : > { %v300_v14 = vsel %vm293_vm2, %v680_v13, 0.0 }
 0x209   : > { %301 = vadd.xlane.f32.xlu1 %v300_v14 }
 0x292   : > { %v302_v15 = vpop.xlane.xlu1 %301 }
 0x293   : > { %681 = vrcp.f32 %v302_v15 }
 0x2a0   : > { %v682_v16 = vpop.eup %681 }
 0x2a1   : > { %v304_v17 = vmul.f32 %v682_v16, %v680_v13 }
 0x2a3   : > { %305 = vxpose.xlu1.b32.start.end [1/1] (short) (narrow) %v304_v17, 8  ;;  %620 = vmatmul.mubr.msk.f32.vlgmr.msra.gmra.mxu1 %vm337_vm3, %v304_v17 }
 0x2a4   : > { %624 = vmatprep.mubr.msk.f32.mxu1 %vm766_vm0, %v765_v1 }
 0x31f   : > { %v321_v18 = vpop.trf.xlu1 }
 0x363   : > { %v407_v19 = vpop.f32.mrf.mxu1 }
 0x364   : > { %623 = vmatpush3.msk.msra.mxu1 %vm415_vm4, %v407_v19 }
 0x365   : > { %v621_v20 = vpop.f32.mrf.mxu1  ;;  %625 = vmatmul.mubr.msk.f32.vlgmr.msra.gmra.mxu1 %vm411_vm5, %v321_v18 }
 0x425   : > { %v485_v21 = vpop.f32.mrf.mxu1 }
 0x426   : > { %v489_v23 = vadd.f32 %v485_v21, %v182_v5 }
 0x427   : > { %v626_v25 = vpop.f32.mrf.mxu1 }
 0x428   : > { %v491_v26 = vmul.f32 %v490_v22, %v489_v23 }
 0x42a   : > { %v493_v27 = vadd.f32 %v492_v24, %v491_v26 }
 0x42c   : > { %494 = vst.msk [vmem:[%s175_s30] sm:$0xff] %vm187_vm1, %v493_v27 }
 0x42d   : > { %711 = shalt.err (!%p708_p2)
}
 0x42e   : > { %s712_s17 = scalar_lea.hbm %s507_s7, 128  ;;  %s716_s24 = scalar_lea.hbm %s913_s3, 256 }
 0x42f   : > { %p713_p3 = scmp.ne.s32.totalorder %s507_s7, %s712_s17  ;;  %p717_p8 = scmp.lt.s32.totalorder %s507_s7, %s913_s3 }
 0x430   : > { %p718_p11 = scmp.lt.s32.totalorder %s716_s24, %s712_s17 }
 0x431   : > { %p714_p4 = pnand %p713_p3, %p826_p5 }
 0x432   : > { %p719_p9 = por %p718_p11, %p717_p8 }
 0x433   : > { %p715_p7 = pneg %p714_p4 }
 0x435   : > { %p720_p10 = pnand %p719_p9, %p715_p7 }
 0x437   : > { %723 = shalt.err (!%p720_p10)
}
 0x438   : > { %631 = dma.vmem_to_hbm [thread:$0]  (%p826_p5), %s510_s4, 128, %s507_s7, %s496_s8  }
 0x439 PF: > { %p643_p12 = scmp.ge.s32.totalorder %s762_s15, 2  ;;  %s521_s27 = sand.u32 1, %s750_s12  }
 0x43a   : > { %s522_s28 = scalar_lea.sflag [#allocation3], %s521_s27 }
 0x43b   : > { %p638_p13 = pnand %p643_p12, %p830_p6 }
 0x43d   : > { %p639_p0 = pneg %p638_p13 }
 0x43f   : > { %745 = dma.done.wait (%p639_p0), %s522_s28, 128  }
 0x440   : > { %747 = vsyncadd (%p639_p0), %s522_s28, 4294967168  ;;  %p14_p1 = scmp.ge.s32.totalorder %s813_s18, 4   ;;  %s917_s12 = smov %s754_s13 }
 0x441   : > { %s918_s13 = smov %s758_s14  ;;  %s919_s14 = smov %s824_s21 }
 0x442   : > { %s920_s15 = smov %s813_s18  ;;  %16 = sbr.rel (!%p14_p1) target bundleno = 4 (0x4), region = 72 }
 0x447   :  { %527 = vsyncpa [#allocation3], 1 }
 0x448   :  { %529 = vsyncpa [#allocation3 + $0x1], 1 }
 0x449   :  { %530 = vsyncpa [#allocation4], 1 }
 0x44a   :  { %532 = vsyncpa [#allocation4 + $0x1], 1 }

</bundles_post_ra>
